<compile_context>
chip_gen: v7x
topology: tpu7x:2x2x1
jax: 0.10.0
libtpu: 0.0.40
codegen_flags: <defaults>
</compile_context>

<pallas_src>
import math

import jax
import jax.numpy as jnp
from jax.experimental import pallas as pl
from jax.experimental.pallas import tpu as pltpu


def _round_up(x: int, m: int) -> int:
    return ((x + m - 1) // m) * m


def _round_down(x: int, m: int) -> int:
    return (x // m) * m


def _tpu_vmem_policy():
    """Returns (vmem_budget_bytes, tm_cap, want_grid_ge_2) for the local TPU gen."""
    kind = ""
    try:
        kind = jax.devices()[0].device_kind.lower()
    except Exception:
        pass
    if "v7" in kind:
        # 64 MiB VMEM per TensorCore: leave headroom, keep tiles modest, use both TCs.
        return 48 << 20, 256, True
    if "v6" in kind:
        # 128 MiB physical; measured tile sweep prefers ~1024-row tiles when they fit.
        return 100 << 20, 1024, False
    if "v5" in kind:
        # 128 MiB physical (but only 16 MiB *default* scoped VMEM -> must raise limit).
        return 100 << 20, 512, False
    return 48 << 20, 512, False  # unknown hardware: be conservative


def _make_mlp_kernel(num_layers: int, final_relu: bool):
    """Kernel over one row tile: h = x; per layer h = h @ W + b (ReLU between layers)."""

    def kernel(x_ref, *refs):
        o_ref = refs[-1]
        wb_refs = refs[:-1]  # w0, b0, w1, b1, ...
        h = x_ref[...]
        for li in range(num_layers):
            w = wb_refs[2 * li][...]                          # (d_in, d_out), lane-dense
            b = wb_refs[2 * li + 1][...].astype(jnp.float32)  # (1, d_out), f32 add
            # Native-dtype MXU operands (bf16 stays bf16), f32 accumulation.
            lhs = h if h.dtype == w.dtype else h.astype(w.dtype)
            h = jnp.dot(lhs, w, preferred_element_type=jnp.float32) + b
            if li < num_layers - 1 or final_relu:
                h = jnp.maximum(h, 0.0)                       # ReLU (VPU), f32
        o_ref[...] = h.astype(o_ref.dtype)

    return kernel


def prepare_mlp_params(weights, biases, param_dtype=None):
    """One-time conversion from PyTorch layout to kernel layout.

    weights[i]: (out_i, in_i)  ->  (in_i, out_i)   (lane-dense)
    biases[i] : (out_i,)       ->  (1, out_i)
    Optionally cast params (e.g. to bf16) once, instead of per call.
    """
    ws, bs = [], []
    for w, b in zip(weights, biases):
        w = jnp.asarray(w).T
        b = jnp.asarray(b).reshape(1, -1)
        if param_dtype is not None:
            w = w.astype(param_dtype)
            b = b.astype(param_dtype)
        ws.append(w)
        bs.append(b)
    return ws, bs


def _group_layers(ws, bs, weight_budget_bytes):
    """Greedily group consecutive layers so resident params fit the VMEM budget."""
    groups, cur, cur_bytes = [], [], 0
    for w, b in zip(ws, bs):
        wb = w.size * w.dtype.itemsize + b.size * b.dtype.itemsize
        if cur and cur_bytes + wb > weight_budget_bytes:
            groups.append(cur)
            cur, cur_bytes = [], 0
        cur.append((w, b))
        cur_bytes += wb
    groups.append(cur)
    return groups


def _fused_group_call(x2d, ws, bs, *, final_relu, out_dtype, tm_eff, vmem_limit,
                      single_buffer_params):
    m, d_in = x2d.shape
    d_out = ws[-1].shape[1]
    grid = (pl.cdiv(m, tm_eff),)

    param_kwargs = {"pipeline_mode": pl.Buffered(1)} if single_buffer_params else {}

    in_specs = [pl.BlockSpec((tm_eff, d_in), lambda i: (i, 0))]   # pipelined x tiles
    operands = [x2d]
    for w, b in zip(ws, bs):
        # Full blocks + constant index_map -> DMA'd once, resident across the grid.
        in_specs.append(pl.BlockSpec(w.shape, lambda i: (0, 0), **param_kwargs))
        in_specs.append(pl.BlockSpec(b.shape, lambda i: (0, 0), **param_kwargs))
        operands.append(w)
        operands.append(b)

    return pl.pallas_call(
        _make_mlp_kernel(len(ws), final_relu),
        out_shape=jax.ShapeDtypeStruct((m, d_out), out_dtype),
        grid_spec=pltpu.PrefetchScalarGridSpec(
            num_scalar_prefetch=0,
            grid=grid,
            in_specs=in_specs,
            out_specs=pl.BlockSpec((tm_eff, d_out), lambda i: (i, 0)),
        ),
        compiler_params=pltpu.CompilerParams(
            dimension_semantics=("parallel",),   # independent row tiles (v7x megacore)
            vmem_limit_bytes=int(vmem_limit),
        ),
    )(*operands)


def mlp_forward(x, params):
    """Fused MLP forward.

    x:      (..., in_features)
    params: (ws, bs) from prepare_mlp_params()
    """
    ws, bs = params
    assert len(ws) == len(bs) and len(ws) >= 1

    orig_shape = x.shape
    d_in = int(orig_shape[-1])
    m = int(math.prod(orig_shape[:-1])) if len(orig_shape) > 1 else 1
    x2d = x.reshape(m, d_in)

    vmem_budget, tm_cap, want_grid_ge_2 = _tpu_vmem_policy()

    # If resident params of the whole MLP blow the budget, split into fused groups.
    groups = _group_layers(ws, bs, int(0.6 * vmem_budget))

    h = x2d
    for gi, group in enumerate(groups):
        gw = [w for w, _ in group]
        gb = [b for _, b in group]
        last_group = gi == len(groups) - 1
        d_in_g = gw[0].shape[0]
        d_out_g = gw[-1].shape[1]
        out_dtype = x.dtype

        # Per-row VMEM cost: 2x pipelined x tile + 2x pipelined out tile
        # + f32 intermediate h (and one dtype-cast copy) at the widest layer.
        param_bytes = sum(w.size * w.dtype.itemsize for w in gw) \
            + sum(b.size * b.dtype.itemsize for b in gb)
        max_width = max([d_in_g] + [w.shape[1] for w in gw])
        per_row = (2 * d_in_g * h.dtype.itemsize
                   + 2 * d_out_g * jnp.dtype(out_dtype).itemsize
                   + 8 * max_width)
        avail = vmem_budget - param_bytes - (4 << 20)   # slack for internal scratch

        tm_eff = tm_cap
        if avail > 0:
            tm_eff = min(tm_eff, max(8, _round_down(avail // per_row, 8)))
        else:
            # A single layer's weights exceed the VMEM budget.
            # TODO(synk): stream weight K/N tiles (pltpu.emit_pipeline) instead of
            # relying on a raised vmem_limit with a minimal row tile.
            tm_eff = 8
        tm_eff = min(tm_eff, _round_up(m, 8))
        if want_grid_ge_2 and m >= 512:
            # Ensure >= 2 grid steps so both v7x TensorCores get work.
            tm_eff = min(tm_eff, _round_up(pl.cdiv(m, 2), 8))

        kwargs = dict(final_relu=not last_group, out_dtype=out_dtype,
                      tm_eff=tm_eff, vmem_limit=vmem_budget)
        try:
            h = _fused_group_call(h, gw, gb, single_buffer_params=True, **kwargs)
        except Exception:
            # Fallback if single-buffered resident params are rejected by this jax/mosaic.
            h = _fused_group_call(h, gw, gb, single_buffer_params=False, **kwargs)

    return h.reshape(*orig_shape[:-1], h.shape[-1])


def _init_linear_params(key, in_features, out_features):
    """Mirror nn.Linear default init: uniform(-1/sqrt(fan_in), 1/sqrt(fan_in))."""
    kw, kb = jax.random.split(key)
    bound = 1.0 / math.sqrt(in_features)
    w = jax.random.uniform(kw, (out_features, in_features), jnp.float32, -bound, bound)
    b = jax.random.uniform(kb, (out_features,), jnp.float32, -bound, bound)
    return w, b


if __name__ == "__main__":
    key = jax.random.PRNGKey(0)

    # Small shapes consistent with the module's forward: x is (..., in_features).
    batch, seq = 2, 8
    in_features = 32
    hidden_layers = [64, 32]
    out_features = 8

    kx, kp = jax.random.split(key)
    x = jax.random.normal(kx, (batch, seq, in_features), dtype=jnp.float32)

    dims = [in_features] + hidden_layers + [out_features]
    weights, biases = [], []
    pkeys = jax.random.split(kp, len(dims) - 1)
    for li in range(len(dims) - 1):
        w, b = _init_linear_params(pkeys[li], dims[li], dims[li + 1])
        weights.append(w)
        biases.append(b)

    # One-time parameter preparation (transpose to (in, out), bias to (1, out)).
    params = prepare_mlp_params(weights, biases)

    y = mlp_forward(x, params)
    jax.block_until_ready(y)

    # Plain-JAX reference (same semantics as the PyTorch nn.Sequential of Linear/ReLU).
    h = x
    for li in range(len(weights)):
        h = h @ weights[li].T + biases[li]
        if li < len(weights) - 1:
            h = jnp.maximum(h, 0.0)
    y_ref = h

    assert y.shape == (batch, seq, out_features), y.shape
    assert jnp.allclose(y, y_ref, atol=1e-5, rtol=1e-5)

    print("KERNEL_OK")
</pallas_src>

<mosaic_0001>
module attributes {stable_mosaic.version = 11 : i64} {
  func.func @kernel(%arg0: i32, %arg1: memref<16x32xf32, #tpu.memory_space<vmem>>, %arg2: memref<32x64xf32, #tpu.memory_space<vmem>>, %arg3: memref<1x64xf32, #tpu.memory_space<vmem>>, %arg4: memref<64x32xf32, #tpu.memory_space<vmem>>, %arg5: memref<1x32xf32, #tpu.memory_space<vmem>>, %arg6: memref<32x8xf32, #tpu.memory_space<vmem>>, %arg7: memref<1x8xf32, #tpu.memory_space<vmem>>, %arg8: memref<16x8xf32, #tpu.memory_space<vmem>>) attributes {dimension_semantics = [#tpu.dimension_semantics<parallel>], iteration_bounds = array<i64: 1>, scalar_prefetch = 0 : i64, scratch_operands = 0 : i64, tpu.core_type = #tpu.core_type<tc>, window_params = [{transform_indices = @transform_0, window_bounds = array<i64: 16, 32>}, {pipeline_mode = #tpu.pipeline_mode<synchronous>, transform_indices = @transform_1, window_bounds = array<i64: 32, 64>}, {pipeline_mode = #tpu.pipeline_mode<synchronous>, transform_indices = @transform_2, window_bounds = array<i64: 1, 64>}, {pipeline_mode = #tpu.pipeline_mode<synchronous>, transform_indices = @transform_3, window_bounds = array<i64: 64, 32>}, {pipeline_mode = #tpu.pipeline_mode<synchronous>, transform_indices = @transform_4, window_bounds = array<i64: 1, 32>}, {pipeline_mode = #tpu.pipeline_mode<synchronous>, transform_indices = @transform_5, window_bounds = array<i64: 32, 8>}, {pipeline_mode = #tpu.pipeline_mode<synchronous>, transform_indices = @transform_6, window_bounds = array<i64: 1, 8>}, {transform_indices = @transform_7, window_bounds = array<i64: 16, 8>}]} {
    %c0 = arith.constant 0 : index
    %c0_0 = arith.constant 0 : index
    %0 = vector.load %arg1[%c0, %c0_0] : memref<16x32xf32, #tpu.memory_space<vmem>>, vector<16x32xf32>
    %c0_1 = arith.constant 0 : index
    %c0_2 = arith.constant 0 : index
    %1 = vector.load %arg2[%c0_1, %c0_2] : memref<32x64xf32, #tpu.memory_space<vmem>>, vector<32x64xf32>
    %c0_3 = arith.constant 0 : index
    %c0_4 = arith.constant 0 : index
    %2 = vector.load %arg3[%c0_3, %c0_4] : memref<1x64xf32, #tpu.memory_space<vmem>>, vector<1x64xf32>
    %cst = arith.constant dense<0.000000e+00> : vector<16x64xf32>
    %3 = tpu.matmul %0, %1, %cst {dimension_numbers = #tpu.dot_dimension_numbers<[1], [0], [0], [1], [0, 0, 1, 1], [], []>} : vector<16x32xf32>, vector<32x64xf32>, vector<16x64xf32> -> vector<16x64xf32>
    %4 = vector.broadcast %2 : vector<1x64xf32> to vector<16x64xf32>
    %5 = arith.addf %3, %4 : vector<16x64xf32>
    %cst_5 = arith.constant 0.000000e+00 : f32
    %6 = vector.broadcast %cst_5 : f32 to vector<16x64xf32>
    %7 = arith.maximumf %5, %6 : vector<16x64xf32>
    %c0_6 = arith.constant 0 : index
    %c0_7 = arith.constant 0 : index
    %8 = vector.load %arg4[%c0_6, %c0_7] : memref<64x32xf32, #tpu.memory_space<vmem>>, vector<64x32xf32>
    %c0_8 = arith.constant 0 : index
    %c0_9 = arith.constant 0 : index
    %9 = vector.load %arg5[%c0_8, %c0_9] : memref<1x32xf32, #tpu.memory_space<vmem>>, vector<1x32xf32>
    %cst_10 = arith.constant dense<0.000000e+00> : vector<16x32xf32>
    %10 = tpu.matmul %7, %8, %cst_10 {dimension_numbers = #tpu.dot_dimension_numbers<[1], [0], [0], [1], [0, 0, 1, 1], [], []>} : vector<16x64xf32>, vector<64x32xf32>, vector<16x32xf32> -> vector<16x32xf32>
    %11 = vector.broadcast %9 : vector<1x32xf32> to vector<16x32xf32>
    %12 = arith.addf %10, %11 : vector<16x32xf32>
    %cst_11 = arith.constant 0.000000e+00 : f32
    %13 = vector.broadcast %cst_11 : f32 to vector<16x32xf32>
    %14 = arith.maximumf %12, %13 : vector<16x32xf32>
    %c0_12 = arith.constant 0 : index
    %c0_13 = arith.constant 0 : index
    %15 = vector.load %arg6[%c0_12, %c0_13] : memref<32x8xf32, #tpu.memory_space<vmem>>, vector<32x8xf32>
    %c0_14 = arith.constant 0 : index
    %c0_15 = arith.constant 0 : index
    %16 = vector.load %arg7[%c0_14, %c0_15] : memref<1x8xf32, #tpu.memory_space<vmem>>, vector<1x8xf32>
    %cst_16 = arith.constant dense<0.000000e+00> : vector<16x8xf32>
    %17 = tpu.matmul %14, %15, %cst_16 {dimension_numbers = #tpu.dot_dimension_numbers<[1], [0], [0], [1], [0, 0, 1, 1], [], []>} : vector<16x32xf32>, vector<32x8xf32>, vector<16x8xf32> -> vector<16x8xf32>
    %18 = vector.broadcast %16 : vector<1x8xf32> to vector<16x8xf32>
    %19 = arith.addf %17, %18 : vector<16x8xf32>
    %c0_17 = arith.constant 0 : index
    %c0_18 = arith.constant 0 : index
    %20 = vector.load %arg8[%c0_17, %c0_18] : memref<16x8xf32, #tpu.memory_space<vmem>>, vector<16x8xf32>
    tpu.vector_store %arg8[%c0_17, %c0_18], %19 {strides = array<i32>} : memref<16x8xf32, #tpu.memory_space<vmem>>, vector<16x8xf32>,
    return
  }
  func.func @transform_0(%arg0: i32) -> (i32, i32) {
    %c0_i32 = arith.constant 0 : i32
    %c0_i32_0 = arith.constant 0 : i32
    return %arg0, %c0_i32 : i32, i32
  }
  func.func @transform_1(%arg0: i32) -> (i32, i32) {
    %c0_i32 = arith.constant 0 : i32
    %c0_i32_0 = arith.constant 0 : i32
    %c0_i32_1 = arith.constant 0 : i32
    return %c0_i32, %c0_i32_0 : i32, i32
  }
  func.func @transform_2(%arg0: i32) -> (i32, i32) {
    %c0_i32 = arith.constant 0 : i32
    %c0_i32_0 = arith.constant 0 : i32
    %c0_i32_1 = arith.constant 0 : i32
    return %c0_i32, %c0_i32_0 : i32, i32
  }
  func.func @transform_3(%arg0: i32) -> (i32, i32) {
    %c0_i32 = arith.constant 0 : i32
    %c0_i32_0 = arith.constant 0 : i32
    %c0_i32_1 = arith.constant 0 : i32
    return %c0_i32, %c0_i32_0 : i32, i32
  }
  func.func @transform_4(%arg0: i32) -> (i32, i32) {
    %c0_i32 = arith.constant 0 : i32
    %c0_i32_0 = arith.constant 0 : i32
    %c0_i32_1 = arith.constant 0 : i32
    return %c0_i32, %c0_i32_0 : i32, i32
  }
  func.func @transform_5(%arg0: i32) -> (i32, i32) {
    %c0_i32 = arith.constant 0 : i32
    %c0_i32_0 = arith.constant 0 : i32
    %c0_i32_1 = arith.constant 0 : i32
    return %c0_i32, %c0_i32_0 : i32, i32
  }
  func.func @transform_6(%arg0: i32) -> (i32, i32) {
    %c0_i32 = arith.constant 0 : i32
    %c0_i32_0 = arith.constant 0 : i32
    %c0_i32_1 = arith.constant 0 : i32
    return %c0_i32, %c0_i32_0 : i32, i32
  }
  func.func @transform_7(%arg0: i32) -> (i32, i32) {
    %c0_i32 = arith.constant 0 : i32
    %c0_i32_0 = arith.constant 0 : i32
    return %arg0, %c0_i32 : i32, i32
  }
}

module attributes {stable_mosaic.version = 11 : i64} {
  func.func @kernel(%arg0: i32, %arg1: memref<16x32xf32, #tpu.memory_space<vmem>>, %arg2: memref<32x64xf32, #tpu.memory_space<vmem>>, %arg3: memref<1x64xf32, #tpu.memory_space<vmem>>, %arg4: memref<64x32xf32, #tpu.memory_space<vmem>>, %arg5: memref<1x32xf32, #tpu.memory_space<vmem>>, %arg6: memref<32x8xf32, #tpu.memory_space<vmem>>, %arg7: memref<1x8xf32, #tpu.memory_space<vmem>>, %arg8: memref<16x8xf32, #tpu.memory_space<vmem>>) attributes {dimension_semantics = [#tpu.dimension_semantics<parallel>], iteration_bounds = array<i64: 1>, scalar_prefetch = 0 : i64, scratch_operands = 0 : i64, tpu.core_type = #tpu.core_type<tc>, window_params = [{transform_indices = @transform_0, window_bounds = array<i64: 16, 32>}, {pipeline_mode = #tpu.pipeline_mode<synchronous>, transform_indices = @transform_1, window_bounds = array<i64: 32, 64>}, {pipeline_mode = #tpu.pipeline_mode<synchronous>, transform_indices = @transform_2, window_bounds = array<i64: 1, 64>}, {pipeline_mode = #tpu.pipeline_mode<synchronous>, transform_indices = @transform_3, window_bounds = array<i64: 64, 32>}, {pipeline_mode = #tpu.pipeline_mode<synchronous>, transform_indices = @transform_4, window_bounds = array<i64: 1, 32>}, {pipeline_mode = #tpu.pipeline_mode<synchronous>, transform_indices = @transform_5, window_bounds = array<i64: 32, 8>}, {pipeline_mode = #tpu.pipeline_mode<synchronous>, transform_indices = @transform_6, window_bounds = array<i64: 1, 8>}, {transform_indices = @transform_7, window_bounds = array<i64: 16, 8>}]} {
    %c0 = arith.constant 0 : index
    %c0_0 = arith.constant 0 : index
    %0 = vector.load %arg1[%c0, %c0_0] : memref<16x32xf32, #tpu.memory_space<vmem>>, vector<16x32xf32>
    %c0_1 = arith.constant 0 : index
    %c0_2 = arith.constant 0 : index
    %1 = vector.load %arg2[%c0_1, %c0_2] : memref<32x64xf32, #tpu.memory_space<vmem>>, vector<32x64xf32>
    %c0_3 = arith.constant 0 : index
    %c0_4 = arith.constant 0 : index
    %2 = vector.load %arg3[%c0_3, %c0_4] : memref<1x64xf32, #tpu.memory_space<vmem>>, vector<1x64xf32>
    %cst = arith.constant dense<0.000000e+00> : vector<16x64xf32>
    %3 = tpu.matmul %0, %1, %cst {dimension_numbers = #tpu.dot_dimension_numbers<[1], [0], [0], [1], [0, 0, 1, 1], [], []>} : vector<16x32xf32>, vector<32x64xf32>, vector<16x64xf32> -> vector<16x64xf32>
    %4 = vector.broadcast %2 : vector<1x64xf32> to vector<16x64xf32>
    %5 = arith.addf %3, %4 : vector<16x64xf32>
    %cst_5 = arith.constant 0.000000e+00 : f32
    %6 = vector.broadcast %cst_5 : f32 to vector<16x64xf32>
    %7 = arith.maximumf %5, %6 : vector<16x64xf32>
    %c0_6 = arith.constant 0 : index
    %c0_7 = arith.constant 0 : index
    %8 = vector.load %arg4[%c0_6, %c0_7] : memref<64x32xf32, #tpu.memory_space<vmem>>, vector<64x32xf32>
    %c0_8 = arith.constant 0 : index
    %c0_9 = arith.constant 0 : index
    %9 = vector.load %arg5[%c0_8, %c0_9] : memref<1x32xf32, #tpu.memory_space<vmem>>, vector<1x32xf32>
    %cst_10 = arith.constant dense<0.000000e+00> : vector<16x32xf32>
    %10 = tpu.matmul %7, %8, %cst_10 {dimension_numbers = #tpu.dot_dimension_numbers<[1], [0], [0], [1], [0, 0, 1, 1], [], []>} : vector<16x64xf32>, vector<64x32xf32>, vector<16x32xf32> -> vector<16x32xf32>
    %11 = vector.broadcast %9 : vector<1x32xf32> to vector<16x32xf32>
    %12 = arith.addf %10, %11 : vector<16x32xf32>
    %cst_11 = arith.constant 0.000000e+00 : f32
    %13 = vector.broadcast %cst_11 : f32 to vector<16x32xf32>
    %14 = arith.maximumf %12, %13 : vector<16x32xf32>
    %c0_12 = arith.constant 0 : index
    %c0_13 = arith.constant 0 : index
    %15 = vector.load %arg6[%c0_12, %c0_13] : memref<32x8xf32, #tpu.memory_space<vmem>>, vector<32x8xf32>
    %c0_14 = arith.constant 0 : index
    %c0_15 = arith.constant 0 : index
    %16 = vector.load %arg7[%c0_14, %c0_15] : memref<1x8xf32, #tpu.memory_space<vmem>>, vector<1x8xf32>
    %cst_16 = arith.constant dense<0.000000e+00> : vector<16x8xf32>
    %17 = tpu.matmul %14, %15, %cst_16 {dimension_numbers = #tpu.dot_dimension_numbers<[1], [0], [0], [1], [0, 0, 1, 1], [], []>} : vector<16x32xf32>, vector<32x8xf32>, vector<16x8xf32> -> vector<16x8xf32>
    %18 = vector.broadcast %16 : vector<1x8xf32> to vector<16x8xf32>
    %19 = arith.addf %17, %18 : vector<16x8xf32>
    %c0_17 = arith.constant 0 : index
    %c0_18 = arith.constant 0 : index
    %20 = vector.load %arg8[%c0_17, %c0_18] : memref<16x8xf32, #tpu.memory_space<vmem>>, vector<16x8xf32>
    tpu.vector_store %arg8[%c0_17, %c0_18], %19 {strides = array<i32>} : memref<16x8xf32, #tpu.memory_space<vmem>>, vector<16x8xf32>,
    return
  }
  func.func @transform_0(%arg0: i32) -> (i32, i32) {
    %c0_i32 = arith.constant 0 : i32
    %c0_i32_0 = arith.constant 0 : i32
    return %arg0, %c0_i32 : i32, i32
  }
  func.func @transform_1(%arg0: i32) -> (i32, i32) {
    %c0_i32 = arith.constant 0 : i32
    %c0_i32_0 = arith.constant 0 : i32
    %c0_i32_1 = arith.constant 0 : i32
    return %c0_i32, %c0_i32_0 : i32, i32
  }
  func.func @transform_2(%arg0: i32) -> (i32, i32) {
    %c0_i32 = arith.constant 0 : i32
    %c0_i32_0 = arith.constant 0 : i32
    %c0_i32_1 = arith.constant 0 : i32
    return %c0_i32, %c0_i32_0 : i32, i32
  }
  func.func @transform_3(%arg0: i32) -> (i32, i32) {
    %c0_i32 = arith.constant 0 : i32
    %c0_i32_0 = arith.constant 0 : i32
    %c0_i32_1 = arith.constant 0 : i32
    return %c0_i32, %c0_i32_0 : i32, i32
  }
  func.func @transform_4(%arg0: i32) -> (i32, i32) {
    %c0_i32 = arith.constant 0 : i32
    %c0_i32_0 = arith.constant 0 : i32
    %c0_i32_1 = arith.constant 0 : i32
    return %c0_i32, %c0_i32_0 : i32, i32
  }
  func.func @transform_5(%arg0: i32) -> (i32, i32) {
    %c0_i32 = arith.constant 0 : i32
    %c0_i32_0 = arith.constant 0 : i32
    %c0_i32_1 = arith.constant 0 : i32
    return %c0_i32, %c0_i32_0 : i32, i32
  }
  func.func @transform_6(%arg0: i32) -> (i32, i32) {
    %c0_i32 = arith.constant 0 : i32
    %c0_i32_0 = arith.constant 0 : i32
    %c0_i32_1 = arith.constant 0 : i32
    return %c0_i32, %c0_i32_0 : i32, i32
  }
  func.func @transform_7(%arg0: i32) -> (i32, i32) {
    %c0_i32 = arith.constant 0 : i32
    %c0_i32_0 = arith.constant 0 : i32
    return %arg0, %c0_i32 : i32, i32
  }
}

</mosaic_0001>

<bundles_post_ra>
// kernel: tpu_custom_call.1
= control target key start
LH: loop header
LB: loop body
LE: loop exit
PB: predicated region body
PF: predicated region fallthrough
CT: control target
= control target key end

     0   :  { %vm39_vm0 = vcmask 261120   ;;  %vm138_vm1 = vcmask 523264   ;;  %vm314_vm2 = vcmask 64512   ;;  %s538_s1 = inlined_call_operand.vmem [shape: f32[32,64], index: 1, kind: input, shape index: {}]   ;;  %s539_s0 = inlined_call_operand.vmem [shape: f32[16,32], index: 0, kind: input, shape index: {}]   ;;  %s540_s3 = inlined_call_operand.vmem [shape: f32[64,32], index: 3, kind: input, shape index: {}]   ;;  %s541_s5 = inlined_call_operand.vmem [shape: f32[32,8], index: 5, kind: input, shape index: {}]   ;;  %s542_s2 = inlined_call_operand.vmem [shape: f32[1,64], index: 2, kind: input, shape index: {}]   ;;  %s543_s4 = inlined_call_operand.vmem [shape: f32[1,32], index: 4, kind: input, shape index: {}]   ;;  %s544_s6 = inlined_call_operand.vmem [shape: f32[1,8], index: 6, kind: input, shape index: {}]   ;;  %s545_s7 = inlined_call_operand.vmem [shape: f32[16,8], index: 7, kind: output, shape index: {}]  }
   0x1   :  { %v28_v0 = vld [vmem:[%s538_s1] sm:$0xff]  ;;  %v29_v1 = vld [vmem:[%s538_s1 + $0x8] sm:$0xff]  ;;  %v30_v2 = vld [vmem:[%s538_s1 + $0x10] sm:$0xff] }
   0x2   :  { %v393_v3 = vpack.c.bf16 %v29_v1, %v28_v0  ;;  %v31_v4 = vld [vmem:[%s538_s1 + $0x18] sm:$0xff]  ;;  %v26_v5 = vld [vmem:[%s539_s0] sm:$0xff]  ;;  %v124_v8 = vld [vmem:[%s540_s3 + $0x8] sm:$0xff] }
   0x3   :  { %v397_v6 = vpack.c.bf16 %v31_v4, %v30_v2  ;;  %360 = vmatprep.mubr.msk.f32.mxu0 %vm39_vm0, %v26_v5  ;;  %v123_v7 = vld [vmem:[%s540_s3] sm:$0xff]  ;;  %v125_v9 = vld [vmem:[%s540_s3 + $0x10] sm:$0xff]  ;;  %v126_v11 = vld [vmem:[%s540_s3 + $0x18] sm:$0xff] }
   0x4   :  { %394 = vmatprep.subr.bf16.mxu0 %v393_v3  ;;  %v401_v10 = vpack.c.bf16 %v124_v8, %v123_v7  ;;  %v405_v12 = vpack.c.bf16 %v126_v11, %v125_v9  ;;  %v127_v13 = vld [vmem:[%s540_s3 + $0x20] sm:$0xff]  ;;  %v128_v14 = vld [vmem:[%s540_s3 + $0x28] sm:$0xff]  ;;  %v129_v17 = vld [vmem:[%s540_s3 + $0x30] sm:$0xff] }
   0x5   :  { %396 = vmatpush3.bf16.msra.mxu0 %v393_v3  ;;  %v409_v15 = vpack.c.bf16 %v128_v14, %v127_v13  ;;  %v27_v16 = vld [vmem:[%s539_s0 + $0x8] sm:$0xff]  ;;  %v130_v18 = vld [vmem:[%s540_s3 + $0x38] sm:$0xff]  ;;  %v222_v20 = vld [vmem:[%s541_s5] sm:$0xff] }
   0x6   :  { %398 = vmatprep.subr.bf16.mxu0 %v397_v6  ;;  %402 = vmatprep.subr.bf16.mxu1 %v401_v10  ;;  %v413_v19 = vpack.c.bf16 %v130_v18, %v129_v17  ;;  %v223_v21 = vld [vmem:[%s541_s5 + $0x8] sm:$0xff]  ;;  %v321_v23 = vld [vmem:[%s542_s2] ss:$0 sm:$0xff]  ;;  %v224_v30 = vld [vmem:[%s541_s5 + $0x10] sm:$0xff] }
   0x7   :  { %404 = vmatpush3.bf16.msra.mxu1 %v401_v10  ;;  %v417_v22 = vpack.c.bf16 %v223_v21, %v222_v20  ;;  %v225_v31 = vld [vmem:[%s541_s5 + $0x18] sm:$0xff]  ;;  %v324_v33 = vld [vmem:[%s543_s4] ss:$0 sm:$0xff] }
   0x8   :  { %406 = vmatprep.subr.bf16.mxu1 %v405_v12  ;;  %v421_v32 = vpack.c.bf16 %v225_v31, %v224_v30  ;;  %v327_v40 = vld [vmem:[%s544_s6] ss:$0 sm:$0xff] }
   0x9   :  { %400 = vmatpush3.bf16.msra.mxu0 %v397_v6 }
   0xa   :  { %418 = vmatprep.subr.bf16.mxu0 %v417_v22 }
   0xb   :  { %408 = vmatpush3.bf16.msra.mxu1 %v405_v12 }
   0xc   :  { %361 = vmatmul.mubr.msk.f32.vlgmr.msra.gmra.mrb[0].mxu0 %vm39_vm0, %v27_v16  ;;  %410 = vmatprep.subr.bf16.mxu1 %v409_v15 }
   0xd   :  { %420 = vmatpush3.bf16.msra.mxu0 %v417_v22 }
   0xe   :  { %422 = vmatprep.subr.bf16.mxu0 %v421_v32 }
   0xf   :  { %412 = vmatpush3.bf16.msra.mxu1 %v409_v15 }
  0x10   :  { %414 = vmatprep.subr.bf16.mxu1 %v413_v19 }
  0x11   :  { %424 = vmatpush3.bf16.msra.mxu0 %v421_v32 }
  0x13   :  { %416 = vmatpush3.bf16.msra.mxu1 %v413_v19 }
  0xdf   :  { %v362_v24 = vpop.f32.mrb[0].mxu0 }
  0xe0   :  { %v118_v25 = vadd.f32 %v362_v24, %v321_v23  ;;  %v112_v26 = vpop.f32.mrb[1].mxu0 }
  0xe1   :  { %v113_v27 = vadd.f32 %v321_v23, %v112_v26 }
  0xe2   :  { %v122_v29 = vmax.f32 %v118_v25, 0.0 }
  0xe3   :  { %v121_v28 = vmax.f32 %v113_v27, 0.0 }
  0xe5   :  { %379 = vmatprep.mubr.msk.f32.mxu1 %vm138_vm1, %v121_v28 }
  0xe6   :  { %380 = vmatmul.mubr.msk.f32.vlgmr.msra.gmra.mrb[0].mxu1 %vm138_vm1, %v122_v29 }
 0x1b9   :  { %v381_v34 = vpop.f32.mrb[0].mxu1 }
 0x1ba   :  { %v217_v35 = vadd.f32 %v381_v34, %v324_v33  ;;  %v211_v36 = vpop.f32.mrb[1].mxu1 }
 0x1bb   :  { %v212_v37 = vadd.f32 %v324_v33, %v211_v36 }
 0x1bc   :  { %v221_v39 = vmax.f32 %v217_v35, 0.0 }
 0x1bd   :  { %v220_v38 = vmax.f32 %v212_v37, 0.0 }
 0x1bf   :  { %390 = vmatprep.mubr.msk.f32.mxu0 %vm39_vm0, %v220_v38 }
 0x1c0   :  { %391 = vmatmul.mubr.msk.f32.vlgmr.msra.gmra.mrb[2].mxu0 %vm39_vm0, %v221_v39 }
 0x293   :  { %v392_v41 = vpop.f32.mrb[2].mxu0 }
 0x294   :  { %v311_v42 = vadd.f32 %v392_v41, %v327_v40  ;;  %v305_v43 = vpop.f32.mrb[3].mxu0 }
 0x295   :  { %v306_v44 = vadd.f32 %v327_v40, %v305_v43 }
 0x296   :  { %316 = vst.msk [vmem:[%s545_s7 + $0x8] sm:$0xff] %vm314_vm2, %v311_v42 }
 0x297   :  { %315 = vst.msk [vmem:[%s545_s7] sm:$0xff] %vm314_vm2, %v306_v44 }

// kernel: tpu_custom_call.1
= control target key start
LH: loop header
LB: loop body
LE: loop exit
PB: predicated region body
PF: predicated region fallthrough
CT: control target
= control target key end

     0   :  { %vm39_vm0 = vcmask 261120   ;;  %vm138_vm1 = vcmask 523264   ;;  %vm314_vm2 = vcmask 64512   ;;  %s538_s1 = inlined_call_operand.vmem [shape: f32[32,64], index: 1, kind: input, shape index: {}]   ;;  %s539_s0 = inlined_call_operand.vmem [shape: f32[16,32], index: 0, kind: input, shape index: {}]   ;;  %s540_s3 = inlined_call_operand.vmem [shape: f32[64,32], index: 3, kind: input, shape index: {}]   ;;  %s541_s5 = inlined_call_operand.vmem [shape: f32[32,8], index: 5, kind: input, shape index: {}]   ;;  %s542_s2 = inlined_call_operand.vmem [shape: f32[1,64], index: 2, kind: input, shape index: {}]   ;;  %s543_s4 = inlined_call_operand.vmem [shape: f32[1,32], index: 4, kind: input, shape index: {}]   ;;  %s544_s6 = inlined_call_operand.vmem [shape: f32[1,8], index: 6, kind: input, shape index: {}]   ;;  %s545_s7 = inlined_call_operand.vmem [shape: f32[16,8], index: 7, kind: output, shape index: {}]  }
   0x1   :  { %v28_v0 = vld [vmem:[%s538_s1] sm:$0xff]  ;;  %v29_v1 = vld [vmem:[%s538_s1 + $0x8] sm:$0xff]  ;;  %v30_v2 = vld [vmem:[%s538_s1 + $0x10] sm:$0xff] }
   0x2   :  { %v393_v3 = vpack.c.bf16 %v29_v1, %v28_v0  ;;  %v31_v4 = vld [vmem:[%s538_s1 + $0x18] sm:$0xff]  ;;  %v26_v5 = vld [vmem:[%s539_s0] sm:$0xff]  ;;  %v124_v8 = vld [vmem:[%s540_s3 + $0x8] sm:$0xff] }
   0x3   :  { %v397_v6 = vpack.c.bf16 %v31_v4, %v30_v2  ;;  %360 = vmatprep.mubr.msk.f32.mxu0 %vm39_vm0, %v26_v5  ;;  %v123_v7 = vld [vmem:[%s540_s3] sm:$0xff]  ;;  %v125_v9 = vld [vmem:[%s540_s3 + $0x10] sm:$0xff]  ;;  %v126_v11 = vld [vmem:[%s540_s3 + $0x18] sm:$0xff] }
   0x4   :  { %394 = vmatprep.subr.bf16.mxu0 %v393_v3  ;;  %v401_v10 = vpack.c.bf16 %v124_v8, %v123_v7  ;;  %v405_v12 = vpack.c.bf16 %v126_v11, %v125_v9  ;;  %v127_v13 = vld [vmem:[%s540_s3 + $0x20] sm:$0xff]  ;;  %v128_v14 = vld [vmem:[%s540_s3 + $0x28] sm:$0xff]  ;;  %v129_v17 = vld [vmem:[%s540_s3 + $0x30] sm:$0xff] }
   0x5   :  { %396 = vmatpush3.bf16.msra.mxu0 %v393_v3  ;;  %v409_v15 = vpack.c.bf16 %v128_v14, %v127_v13  ;;  %v27_v16 = vld [vmem:[%s539_s0 + $0x8] sm:$0xff]  ;;  %v130_v18 = vld [vmem:[%s540_s3 + $0x38] sm:$0xff]  ;;  %v222_v20 = vld [vmem:[%s541_s5] sm:$0xff] }
   0x6   :  { %398 = vmatprep.subr.bf16.mxu0 %v397_v6  ;;  %402 = vmatprep.subr.bf16.mxu1 %v401_v10  ;;  %v413_v19 = vpack.c.bf16 %v130_v18, %v129_v17  ;;  %v223_v21 = vld [vmem:[%s541_s5 + $0x8] sm:$0xff]  ;;  %v321_v23 = vld [vmem:[%s542_s2] ss:$0 sm:$0xff]  ;;  %v224_v30 = vld [vmem:[%s541_s5 + $0x10] sm:$0xff] }
   0x7   :  { %404 = vmatpush3.bf16.msra.mxu1 %v401_v10  ;;  %v417_v22 = vpack.c.bf16 %v223_v21, %v222_v20  ;;  %v225_v31 = vld [vmem:[%s541_s5 + $0x18] sm:$0xff]  ;;  %v324_v33 = vld [vmem:[%s543_s4] ss:$0 sm:$0xff] }
   0x8   :  { %406 = vmatprep.subr.bf16.mxu1 %v405_v12  ;;  %v421_v32 = vpack.c.bf16 %v225_v31, %v224_v30  ;;  %v327_v40 = vld [vmem:[%s544_s6] ss:$0 sm:$0xff] }
   0x9   :  { %400 = vmatpush3.bf16.msra.mxu0 %v397_v6 }
   0xa   :  { %418 = vmatprep.subr.bf16.mxu0 %v417_v22 }
   0xb   :  { %408 = vmatpush3.bf16.msra.mxu1 %v405_v12 }
   0xc   :  { %361 = vmatmul.mubr.msk.f32.vlgmr.msra.gmra.mrb[0].mxu0 %vm39_vm0, %v27_v16  ;;  %410 = vmatprep.subr.bf16.mxu1 %v409_v15 }
   0xd   :  { %420 = vmatpush3.bf16.msra.mxu0 %v417_v22 }
   0xe   :  { %422 = vmatprep.subr.bf16.mxu0 %v421_v32 }
   0xf   :  { %412 = vmatpush3.bf16.msra.mxu1 %v409_v15 }
  0x10   :  { %414 = vmatprep.subr.bf16.mxu1 %v413_v19 }
  0x11   :  { %424 = vmatpush3.bf16.msra.mxu0 %v421_v32 }
  0x13   :  { %416 = vmatpush3.bf16.msra.mxu1 %v413_v19 }
  0xdf   :  { %v362_v24 = vpop.f32.mrb[0].mxu0 }
  0xe0   :  { %v118_v25 = vadd.f32 %v362_v24, %v321_v23  ;;  %v112_v26 = vpop.f32.mrb[1].mxu0 }
  0xe1   :  { %v113_v27 = vadd.f32 %v321_v23, %v112_v26 }
  0xe2   :  { %v122_v29 = vmax.f32 %v118_v25, 0.0 }
  0xe3   :  { %v121_v28 = vmax.f32 %v113_v27, 0.0 }
  0xe5   :  { %379 = vmatprep.mubr.msk.f32.mxu1 %vm138_vm1, %v121_v28 }
  0xe6   :  { %380 = vmatmul.mubr.msk.f32.vlgmr.msra.gmra.mrb[0].mxu1 %vm138_vm1, %v122_v29 }
 0x1b9   :  { %v381_v34 = vpop.f32.mrb[0].mxu1 }
 0x1ba   :  { %v217_v35 = vadd.f32 %v381_v34, %v324_v33  ;;  %v211_v36 = vpop.f32.mrb[1].mxu1 }
 0x1bb   :  { %v212_v37 = vadd.f32 %v324_v33, %v211_v36 }
 0x1bc   :  { %v221_v39 = vmax.f32 %v217_v35, 0.0 }
 0x1bd   :  { %v220_v38 = vmax.f32 %v212_v37, 0.0 }
 0x1bf   :  { %390 = vmatprep.mubr.msk.f32.mxu0 %vm39_vm0, %v220_v38 }
 0x1c0   :  { %391 = vmatmul.mubr.msk.f32.vlgmr.msra.gmra.mrb[2].mxu0 %vm39_vm0, %v221_v39 }
 0x293   :  { %v392_v41 = vpop.f32.mrb[2].mxu0 }
 0x294   :  { %v311_v42 = vadd.f32 %v392_v41, %v327_v40  ;;  %v305_v43 = vpop.f32.mrb[3].mxu0 }
 0x295   :  { %v306_v44 = vadd.f32 %v327_v40, %v305_v43 }
 0x296   :  { %316 = vst.msk [vmem:[%s545_s7 + $0x8] sm:$0xff] %vm314_vm2, %v311_v42 }
 0x297   :  { %315 = vst.msk [vmem:[%s545_s7] sm:$0xff] %vm314_vm2, %v306_v44 }

</bundles_post_ra>
